<compile_context>
chip_gen: v5e
topology: v5e:2x2
jax: 0.10.0
libtpu: 0.0.40
codegen_flags: <defaults>
</compile_context>

<pallas_src>
import jax
import jax.numpy as jnp
from jax.experimental import pallas as pl
from jax.experimental.pallas import tpu as pltpu


def affine_kernel(x_ref, w_ref, bias_ref, p_ref, o_ref):
    # x_ref:    (Bblk, c_dim)
    # w_ref:    (c_dim, 12)   = [W_A | W_b] pre-transposed
    # bias_ref: (1, 12)       = [bias_A | bias_b]
    # p_ref:    (3, Bblk, tT) points, xyz on the leading axis, T on the lane axis
    # o_ref:    (3, Bblk, tT)
    y = jnp.dot(x_ref[...], w_ref[...],
                preferred_element_type=jnp.float32) + bias_ref[...]      # (Bblk, 12)
    # y[:, 3k + j] = A[k, j] (row-major 3x3), y[:, 9 + j] = b[j]

    p0 = p_ref[0].astype(jnp.float32)                                    # (Bblk, tT)
    p1 = p_ref[1].astype(jnp.float32)
    p2 = p_ref[2].astype(jnp.float32)

    # out[j, b, :] = sum_k A[b, k, j] * p[k, b, :] + bvec[b, j]
    # (Bblk, 1) coefficient columns broadcast (lane splat) against (Bblk, tT) rows.
    for j in range(3):                                                   # static unroll
        out_j = (y[:, j + 0: j + 1] * p0 +
                 y[:, j + 3: j + 4] * p1 +
                 y[:, j + 6: j + 7] * p2 +
                 y[:, j + 9: j + 10])
        o_ref[j] = out_j.astype(o_ref.dtype)


def affine_layer(x, p, wA, bA, wB, bB, *, b_block=256, t_block=1024):
    """x: (B, c_dim), p: (B, T, 3), wA: (c_dim, 9)=fc_A.weight.T, bA: (9,),
    wB: (c_dim, 3)=fc_b.weight.T, bB: (3,). Returns (B, T, 3)."""
    B, c_dim = x.shape
    _, T, dim = p.shape
    assert dim == 3 and p.shape[0] == B
    assert b_block % 8 == 0

    # Fuse the two linears into one (c_dim, 12) matmul.
    W = jnp.concatenate([wA, wB], axis=1)                 # (c_dim, 12)
    bias = jnp.concatenate([bA, bB]).reshape(1, 12)       # (1, 12)

    # Lane-dense layout: xyz on the leading axis, T on the lane axis.
    p_t = jnp.transpose(p, (2, 0, 1))                     # (3, B, T)

    # Batch block (pad B up to a multiple of Bblk if needed).
    if B <= b_block:
        Bblk, Bpad = B, B
    else:
        Bblk = b_block
        Bpad = -(-B // Bblk) * Bblk

    # T tile: a multiple of 128 (largest candidate dividing T), else the full T.
    if T % 128 == 0:
        tT = 128
        for cand in (1024, 512, 256, 128):
            if cand <= t_block and T % cand == 0:
                tT = cand
                break
    else:
        tT = T

    if Bpad != B:
        x = jnp.pad(x, ((0, Bpad - B), (0, 0)))
        p_t = jnp.pad(p_t, ((0, 0), (0, Bpad - B), (0, 0)))

    grid = (Bpad // Bblk, T // tT)

    out_t = pl.pallas_call(
        affine_kernel,
        out_shape=jax.ShapeDtypeStruct((3, Bpad, T), p.dtype),
        grid_spec=pltpu.PrefetchScalarGridSpec(
            num_scalar_prefetch=0,
            grid=grid,
            in_specs=[
                pl.BlockSpec((Bblk, c_dim), lambda b, t: (b, 0)),     # x block
                pl.BlockSpec((c_dim, 12), lambda b, t: (0, 0)),       # fused weights
                pl.BlockSpec((1, 12), lambda b, t: (0, 0)),           # fused bias
                pl.BlockSpec((3, Bblk, tT), lambda b, t: (0, b, t)),  # p (lane-dense)
            ],
            out_specs=pl.BlockSpec((3, Bblk, tT), lambda b, t: (0, b, t)),
        ),
        compiler_params=pltpu.CompilerParams(
            dimension_semantics=("parallel", "parallel"),
            vmem_limit_bytes=48 * 1024 * 1024,
        ),
    )(x, W, bias, p_t)

    if Bpad != B:
        out_t = out_t[:, :B, :]
    return jnp.transpose(out_t, (1, 2, 0))                # (B, T, 3)


def affine_layer_ref(x, p, wA, bA, wB, bB):
    B = x.shape[0]
    A = (x @ wA + bA).reshape(B, 3, 3)
    b = (x @ wB + bB).reshape(B, 1, 3)
    return jnp.einsum('btk,bkj->btj', p, A) + b


if __name__ == "__main__":
    key = jax.random.PRNGKey(0)
    kx, kp, kwA, kwB, kx2, kp2 = jax.random.split(key, 6)

    dim = 3
    # The PyTorch reset_parameters() zeros the weights (which would make the linear
    # path trivial); we keep the module's bias init (eye(3) and [0,0,2]) but use
    # small deterministic random weights so the kernel's matmul path is exercised.
    bA = jnp.eye(3, dtype=jnp.float32).reshape(-1)          # fc_A.bias
    bB = jnp.array([0.0, 0.0, 2.0], dtype=jnp.float32)      # fc_b.bias

    # Case 1: tiny shapes (single grid step, full-extent blocks).
    B, T, c_dim = 2, 8, 32
    x = jax.random.normal(kx, (B, c_dim), dtype=jnp.float32)
    p = jax.random.normal(kp, (B, T, dim), dtype=jnp.float32)
    wA = 0.1 * jax.random.normal(kwA, (c_dim, dim * dim), dtype=jnp.float32)  # fc_A.weight.T
    wB = 0.1 * jax.random.normal(kwB, (c_dim, dim), dtype=jnp.float32)        # fc_b.weight.T

    out = jax.block_until_ready(affine_layer(x, p, wA, bA, wB, bB))
    ref = affine_layer_ref(x, p, wA, bA, wB, bB)
    assert out.shape == (B, T, dim)
    assert jnp.allclose(out, ref, atol=1e-5, rtol=1e-5), "case 1 mismatch vs reference"

    # Case 2: exercises batch blocking (with padding, B=10 -> Bpad=16) and T tiling.
    B2, T2 = 10, 256
    x2 = jax.random.normal(kx2, (B2, c_dim), dtype=jnp.float32)
    p2 = jax.random.normal(kp2, (B2, T2, dim), dtype=jnp.float32)
    out2 = jax.block_until_ready(
        affine_layer(x2, p2, wA, bA, wB, bB, b_block=8, t_block=128))
    ref2 = affine_layer_ref(x2, p2, wA, bA, wB, bB)
    assert out2.shape == (B2, T2, dim)
    assert jnp.allclose(out2, ref2, atol=1e-5, rtol=1e-5), "case 2 mismatch vs reference"

    print("KERNEL_OK")
</pallas_src>

<mosaic_0001>
module attributes {stable_mosaic.version = 11 : i64} {
  func.func @affine_kernel(%arg0: i32, %arg1: i32, %arg2: memref<2x32xf32, #tpu.memory_space<vmem>>, %arg3: memref<32x12xf32, #tpu.memory_space<vmem>>, %arg4: memref<1x12xf32, #tpu.memory_space<vmem>>, %arg5: memref<3x2x8xf32, #tpu.memory_space<vmem>>, %arg6: memref<3x2x8xf32, #tpu.memory_space<vmem>>) attributes {dimension_semantics = [#tpu.dimension_semantics<parallel>, #tpu.dimension_semantics<parallel>], iteration_bounds = array<i64: 1, 1>, scalar_prefetch = 0 : i64, scratch_operands = 0 : i64, tpu.core_type = #tpu.core_type<tc>, window_params = [{transform_indices = @transform_0, window_bounds = array<i64: 2, 32>}, {pipeline_mode = #tpu.pipeline_mode<synchronous>, transform_indices = @transform_1, window_bounds = array<i64: 32, 12>}, {pipeline_mode = #tpu.pipeline_mode<synchronous>, transform_indices = @transform_2, window_bounds = array<i64: 1, 12>}, {transform_indices = @transform_3, window_bounds = array<i64: 3, 2, 8>}, {transform_indices = @transform_4, window_bounds = array<i64: 3, 2, 8>}]} {
    %c0 = arith.constant 0 : index
    %c0_0 = arith.constant 0 : index
    %0 = vector.load %arg2[%c0, %c0_0] : memref<2x32xf32, #tpu.memory_space<vmem>>, vector<2x32xf32>
    %c0_1 = arith.constant 0 : index
    %c0_2 = arith.constant 0 : index
    %1 = vector.load %arg3[%c0_1, %c0_2] : memref<32x12xf32, #tpu.memory_space<vmem>>, vector<32x12xf32>
    %cst = arith.constant dense<0.000000e+00> : vector<2x12xf32>
    %2 = tpu.matmul %0, %1, %cst {dimension_numbers = #tpu.dot_dimension_numbers<[1], [0], [0], [1], [0, 0, 1, 1], [], []>} : vector<2x32xf32>, vector<32x12xf32>, vector<2x12xf32> -> vector<2x12xf32>
    %c0_3 = arith.constant 0 : index
    %c0_4 = arith.constant 0 : index
    %3 = vector.load %arg4[%c0_3, %c0_4] : memref<1x12xf32, #tpu.memory_space<vmem>>, vector<1x12xf32>
    %4 = vector.broadcast %3 : vector<1x12xf32> to vector<2x12xf32>
    %5 = arith.addf %2, %4 : vector<2x12xf32>
    %c0_5 = arith.constant 0 : index
    %c0_6 = arith.constant 0 : index
    %c0_7 = arith.constant 0 : index
    %6 = vector.load %arg5[%c0_5, %c0_6, %c0_7] : memref<3x2x8xf32, #tpu.memory_space<vmem>>, vector<1x2x8xf32>
    %7 = vector.shape_cast %6 : vector<1x2x8xf32> to vector<2x8xf32>
    %c1 = arith.constant 1 : index
    %c0_8 = arith.constant 0 : index
    %c0_9 = arith.constant 0 : index
    %8 = vector.load %arg5[%c1, %c0_8, %c0_9] : memref<3x2x8xf32, #tpu.memory_space<vmem>>, vector<1x2x8xf32>
    %9 = vector.shape_cast %8 : vector<1x2x8xf32> to vector<2x8xf32>
    %c2 = arith.constant 2 : index
    %c0_10 = arith.constant 0 : index
    %c0_11 = arith.constant 0 : index
    %10 = vector.load %arg5[%c2, %c0_10, %c0_11] : memref<3x2x8xf32, #tpu.memory_space<vmem>>, vector<1x2x8xf32>
    %11 = vector.shape_cast %10 : vector<1x2x8xf32> to vector<2x8xf32>
    %12 = vector.extract_strided_slice %5 {offsets = [0, 0], sizes = [2, 1], strides = [1, 1]} : vector<2x12xf32> to vector<2x1xf32>
    %13 = vector.broadcast %12 : vector<2x1xf32> to vector<2x8xf32>
    %14 = arith.mulf %13, %7 : vector<2x8xf32>
    %15 = vector.extract_strided_slice %5 {offsets = [0, 3], sizes = [2, 1], strides = [1, 1]} : vector<2x12xf32> to vector<2x1xf32>
    %16 = vector.broadcast %15 : vector<2x1xf32> to vector<2x8xf32>
    %17 = arith.mulf %16, %9 : vector<2x8xf32>
    %18 = arith.addf %14, %17 : vector<2x8xf32>
    %19 = vector.extract_strided_slice %5 {offsets = [0, 6], sizes = [2, 1], strides = [1, 1]} : vector<2x12xf32> to vector<2x1xf32>
    %20 = vector.broadcast %19 : vector<2x1xf32> to vector<2x8xf32>
    %21 = arith.mulf %20, %11 : vector<2x8xf32>
    %22 = arith.addf %18, %21 : vector<2x8xf32>
    %23 = vector.extract_strided_slice %5 {offsets = [0, 9], sizes = [2, 1], strides = [1, 1]} : vector<2x12xf32> to vector<2x1xf32>
    %24 = vector.broadcast %23 : vector<2x1xf32> to vector<2x8xf32>
    %25 = arith.addf %22, %24 : vector<2x8xf32>
    %c0_12 = arith.constant 0 : index
    %c0_13 = arith.constant 0 : index
    %c0_14 = arith.constant 0 : index
    %26 = vector.load %arg6[%c0_12, %c0_13, %c0_14] : memref<3x2x8xf32, #tpu.memory_space<vmem>>, vector<1x2x8xf32>
    %27 = vector.shape_cast %26 : vector<1x2x8xf32> to vector<2x8xf32>
    %28 = vector.shape_cast %25 : vector<2x8xf32> to vector<1x2x8xf32>
    tpu.vector_store %arg6[%c0_12, %c0_13, %c0_14], %28 {strides = array<i32>} : memref<3x2x8xf32, #tpu.memory_space<vmem>>, vector<1x2x8xf32>,
    %29 = vector.extract_strided_slice %5 {offsets = [0, 1], sizes = [2, 1], strides = [1, 1]} : vector<2x12xf32> to vector<2x1xf32>
    %30 = vector.broadcast %29 : vector<2x1xf32> to vector<2x8xf32>
    %31 = arith.mulf %30, %7 : vector<2x8xf32>
    %32 = vector.extract_strided_slice %5 {offsets = [0, 4], sizes = [2, 1], strides = [1, 1]} : vector<2x12xf32> to vector<2x1xf32>
    %33 = vector.broadcast %32 : vector<2x1xf32> to vector<2x8xf32>
    %34 = arith.mulf %33, %9 : vector<2x8xf32>
    %35 = arith.addf %31, %34 : vector<2x8xf32>
    %36 = vector.extract_strided_slice %5 {offsets = [0, 7], sizes = [2, 1], strides = [1, 1]} : vector<2x12xf32> to vector<2x1xf32>
    %37 = vector.broadcast %36 : vector<2x1xf32> to vector<2x8xf32>
    %38 = arith.mulf %37, %11 : vector<2x8xf32>
    %39 = arith.addf %35, %38 : vector<2x8xf32>
    %40 = vector.extract_strided_slice %5 {offsets = [0, 10], sizes = [2, 1], strides = [1, 1]} : vector<2x12xf32> to vector<2x1xf32>
    %41 = vector.broadcast %40 : vector<2x1xf32> to vector<2x8xf32>
    %42 = arith.addf %39, %41 : vector<2x8xf32>
    %c1_15 = arith.constant 1 : index
    %c0_16 = arith.constant 0 : index
    %c0_17 = arith.constant 0 : index
    %43 = vector.load %arg6[%c1_15, %c0_16, %c0_17] : memref<3x2x8xf32, #tpu.memory_space<vmem>>, vector<1x2x8xf32>
    %44 = vector.shape_cast %43 : vector<1x2x8xf32> to vector<2x8xf32>
    %45 = vector.shape_cast %42 : vector<2x8xf32> to vector<1x2x8xf32>
    tpu.vector_store %arg6[%c1_15, %c0_16, %c0_17], %45 {strides = array<i32>} : memref<3x2x8xf32, #tpu.memory_space<vmem>>, vector<1x2x8xf32>,
    %46 = vector.extract_strided_slice %5 {offsets = [0, 2], sizes = [2, 1], strides = [1, 1]} : vector<2x12xf32> to vector<2x1xf32>
    %47 = vector.broadcast %46 : vector<2x1xf32> to vector<2x8xf32>
    %48 = arith.mulf %47, %7 : vector<2x8xf32>
    %49 = vector.extract_strided_slice %5 {offsets = [0, 5], sizes = [2, 1], strides = [1, 1]} : vector<2x12xf32> to vector<2x1xf32>
    %50 = vector.broadcast %49 : vector<2x1xf32> to vector<2x8xf32>
    %51 = arith.mulf %50, %9 : vector<2x8xf32>
    %52 = arith.addf %48, %51 : vector<2x8xf32>
    %53 = vector.extract_strided_slice %5 {offsets = [0, 8], sizes = [2, 1], strides = [1, 1]} : vector<2x12xf32> to vector<2x1xf32>
    %54 = vector.broadcast %53 : vector<2x1xf32> to vector<2x8xf32>
    %55 = arith.mulf %54, %11 : vector<2x8xf32>
    %56 = arith.addf %52, %55 : vector<2x8xf32>
    %57 = vector.extract_strided_slice %5 {offsets = [0, 11], sizes = [2, 1], strides = [1, 1]} : vector<2x12xf32> to vector<2x1xf32>
    %58 = vector.broadcast %57 : vector<2x1xf32> to vector<2x8xf32>
    %59 = arith.addf %56, %58 : vector<2x8xf32>
    %c2_18 = arith.constant 2 : index
    %c0_19 = arith.constant 0 : index
    %c0_20 = arith.constant 0 : index
    %60 = vector.load %arg6[%c2_18, %c0_19, %c0_20] : memref<3x2x8xf32, #tpu.memory_space<vmem>>, vector<1x2x8xf32>
    %61 = vector.shape_cast %60 : vector<1x2x8xf32> to vector<2x8xf32>
    %62 = vector.shape_cast %59 : vector<2x8xf32> to vector<1x2x8xf32>
    tpu.vector_store %arg6[%c2_18, %c0_19, %c0_20], %62 {strides = array<i32>} : memref<3x2x8xf32, #tpu.memory_space<vmem>>, vector<1x2x8xf32>,
    return
  }
  func.func @transform_0(%arg0: i32, %arg1: i32) -> (i32, i32) {
    %c0_i32 = arith.constant 0 : i32
    %c0_i32_0 = arith.constant 0 : i32
    return %arg0, %c0_i32 : i32, i32
  }
  func.func @transform_1(%arg0: i32, %arg1: i32) -> (i32, i32) {
    %c0_i32 = arith.constant 0 : i32
    %c0_i32_0 = arith.constant 0 : i32
    %c0_i32_1 = arith.constant 0 : i32
    return %c0_i32, %c0_i32_0 : i32, i32
  }
  func.func @transform_2(%arg0: i32, %arg1: i32) -> (i32, i32) {
    %c0_i32 = arith.constant 0 : i32
    %c0_i32_0 = arith.constant 0 : i32
    %c0_i32_1 = arith.constant 0 : i32
    return %c0_i32, %c0_i32_0 : i32, i32
  }
  func.func @transform_3(%arg0: i32, %arg1: i32) -> (i32, i32, i32) {
    %c0_i32 = arith.constant 0 : i32
    %c0_i32_0 = arith.constant 0 : i32
    return %c0_i32, %arg0, %arg1 : i32, i32, i32
  }
  func.func @transform_4(%arg0: i32, %arg1: i32) -> (i32, i32, i32) {
    %c0_i32 = arith.constant 0 : i32
    %c0_i32_0 = arith.constant 0 : i32
    return %c0_i32, %arg0, %arg1 : i32, i32, i32
  }
}

</mosaic_0001>

<bundles_post_ra>
// kernel: tpu_custom_call.1
= control target key start
LH: loop header
LB: loop body
LE: loop exit
PB: predicated region body
PF: predicated region fallthrough
CT: control target
= control target key end

     0   :  { %s278_s0 = inlined_call_operand.vmem [shape: f32[2,32], index: 0, kind: input, shape index: {}]   ;;  %s279_s1 = inlined_call_operand.vmem [shape: f32[32,12], index: 1, kind: input, shape index: {}]   ;;  %s280_s2 = inlined_call_operand.vmem [shape: f32[1,12], index: 2, kind: input, shape index: {}]   ;;  %s281_s3 = inlined_call_operand.vmem [shape: f32[3,2,8], index: 3, kind: input, shape index: {}]   ;;  %s282_s4 = inlined_call_operand.hbm [shape: f32[3,2,8], index: 4, kind: output, shape index: {}]  }
   0x1   :  { %v22_v0 = vld [vmem:[%s279_s1 + $0x18] sm:$0xff]  ;;  %v21_v1 = vld [vmem:[%s279_s1 + $0x10] sm:$0xff]  ;;  %v20_v2 = vld [vmem:[%s279_s1 + $0x8] sm:$0xff] }
   0x2   :  { %43 = vmatpush.msra.mxu0 %v22_v0 }
   0x3   :  { %9 = vsyncpa [#allocation3], 0  ;;  %v19_v3 = vld [vmem:[%s279_s1] sm:$0xff]  ;;  %vm27_vm0 = vcmask 261120   ;;  %v205_v5 = vmov 1   ;;  %v206_v6 = vmov 6  }
   0x4   :  { %44 = vmatpush.msra.mxu0 %v21_v1  ;;  %v18_v4 = vld [vmem:[%s278_s0] sm:$0x3]  ;;  %169 = vset.pattern.permute.xlu2 %v205_v5  ;;  %v207_v7 = vmov 0   ;;  %v208_v11 = vmov 4   ;;  %v209_v12 = vmov 9   ;;  %v210_v13 = vmov 3  }
   0x5   :  { %167 = vset.pattern.permute.xlu1 %v206_v6  ;;  %165 = vset.pattern.permute.xlu0 %v207_v7  ;;  %v178_v8 = vld [vmem:[%s280_s2] ss:$0 sm:$0xff]  ;;  %v211_v14 = vmov 5   ;;  %v212_v15 = vmov 2   ;;  %v213_v16 = vmov 7   ;;  %v214_v17 = vmov 10  }
   0x6   :  { %45 = vmatpush.msra.mxu0 %v20_v2  ;;  %v215_v18 = vmov 8   ;;  %v216_v19 = vmov 11   ;;  %v51_v24 = vld [vmem:[%s281_s3] sm:$0x3]  ;;  %v148_v25 = vld [vmem:[%s281_s3 + $0x2] sm:$0x3] }
   0x7   :  { %v149_v26 = vld [vmem:[%s281_s3 + $0x4] sm:$0x3]  ;;  %vm79_vm1 = vcmask 58368   ;;  %s217_s3 = smov [#allocation2]   ;;  %s135_s7 = sshll.u32 %s282_s4, 4  ;;  %s136_s7 = int_to_ptr.hbm [resolvable:$true] %s135_s7 }
   0x8   :  { %46 = vmatpush.msra.mxu0 %v19_v3  ;;  %s133_s30 = sshll.u32 %s217_s3, 4  ;;  %s218_s8 = smov 32   ;;  %s134_s30 = int_to_ptr.vmem [resolvable:$true] %s133_s30 }
   0x9   :  { %147 = vmatmul.msk.f32.vlgmr.msra.gmra.mxu0 %vm27_vm0, %v18_v4  ;;  %s219_s9 = smov 2  }
  0x86   :  { %v48_v9 = vpop.f32.mrf.mxu0 }
  0x87   :  { %v49_v10 = vadd.f32 %v178_v8, %v48_v9 }
  0x89   :  { %82 = vperm.xlu2 %169, %v49_v10   ;;  %69 = vperm.xlu1 %167, %v49_v10  }
  0x8a   :  { %58 = vperm.xlu0 %165, %v49_v10  }
  0x91   :  { %170 = vset.pattern.permute.xlu2 %v208_v11  ;;  %168 = vset.pattern.permute.xlu1 %v209_v12 }
  0x92   :  { %166 = vset.pattern.permute.xlu0 %v210_v13  ;;  %87 = vperm.xlu2 %170, %v49_v10  }
  0x93   :  { %75 = vperm.xlu1 %168, %v49_v10   ;;  %63 = vperm.xlu0 %166, %v49_v10  }
  0x9a   :  { %172 = vset.pattern.permute.xlu2 %v211_v14 }
  0x9b   :  { %171 = vset.pattern.permute.xlu1 %v212_v15  ;;  %173 = vset.pattern.permute.xlu0 %v213_v16 }
  0x9c   :  { %111 = vperm.xlu2 %172, %v49_v10   ;;  %106 = vperm.xlu1 %171, %v49_v10  }
  0x9d   :  { %93 = vperm.xlu0 %173, %v49_v10  }
  0xa4   :  { %175 = vset.pattern.permute.xlu2 %v214_v17  ;;  %174 = vset.pattern.permute.xlu1 %v215_v18 }
  0xa5   :  { %99 = vperm.xlu2 %175, %v49_v10   ;;  %117 = vperm.xlu1 %174, %v49_v10  }
  0xa6   :  { %177 = vset.pattern.permute.xlu0 %v216_v19 }
  0xad   :  { %176 = vset.pattern.permute.xlu1 %v216_v19 }
  0xae   :  { %123 = vperm.xlu1 %176, %v49_v10  }
  0xe3   :  { %v83_v20 = vpop.permute.xlu2 %82 }
  0xe4   :  { %v85_v37 = vmul.f32 %v83_v20, %v51_v24 }
  0xec   :  { %v88_v23 = vpop.permute.xlu2 %87 }
  0xed   :  { %v90_v35 = vmul.f32 %v148_v25, %v88_v23 }
  0xef   :  { %v91_v40 = vadd.f32 %v90_v35, %v85_v37 }
  0xf6   :  { %v112_v33 = vpop.permute.xlu2 %111 }
  0xf7   :  { %v114_v47 = vmul.f32 %v148_v25, %v112_v33 }
  0xfb   :  { %v70_v21 = vpop.permute.xlu1 %69 }
  0xfc   :  { %v59_v22 = vpop.permute.xlu0 %58  ;;  %v72_v31 = vmul.f32 %v149_v26, %v70_v21 }
  0xfd   :  { %v61_v29 = vmul.f32 %v59_v22, %v51_v24 }
  0xff   :  { %v100_v43 = vpop.permute.xlu2 %99 }
 0x105   :  { %v76_v27 = vpop.permute.xlu1 %75  ;;  %v64_v28 = vpop.permute.xlu0 %63 }
 0x106   :  { %v66_v30 = vmul.f32 %v148_v25, %v64_v28 }
 0x108   :  { %v67_v32 = vadd.f32 %v66_v30, %v61_v29 }
 0x10a   :  { %v73_v34 = vadd.f32 %v72_v31, %v67_v32 }
 0x10c   :  { %v78_v36 = vadd.f32 %v76_v27, %v73_v34 }
 0x10e   :  { %v107_v38 = vpop.permute.xlu1 %106  ;;  %80 = vst.msk [vmem:[#allocation2] sm:$0x3] %vm79_vm1, %v78_v36 }
 0x10f   :  { %v94_v39 = vpop.permute.xlu0 %93  ;;  %v109_v46 = vmul.f32 %v107_v38, %v51_v24 }
 0x110   :  { %v96_v41 = vmul.f32 %v149_v26, %v94_v39 }
 0x111   :  { %v115_v49 = vadd.f32 %v114_v47, %v109_v46 }
 0x112   :  { %v97_v42 = vadd.f32 %v96_v41, %v91_v40 }
 0x114   :  { %v102_v44 = vadd.f32 %v100_v43, %v97_v42 }
 0x116   :  { %104 = vst.msk [vmem:[#allocation2 + $0x2] sm:$0x3] %vm79_vm1, %v102_v44 }
 0x117   :  { %v118_v45 = vpop.permute.xlu1 %117 }
 0x118   :  { %v120_v48 = vmul.f32 %v149_v26, %v118_v45 }
 0x11a   :  { %v121_v50 = vadd.f32 %v120_v48, %v115_v49 }
 0x120   :  { %v124_v51 = vpop.permute.xlu1 %123 }
 0x121   :  { %v126_v52 = vadd.f32 %v124_v51, %v121_v50 }
 0x123   :  { %128 = vst.msk [vmem:[#allocation2 + $0x4] sm:$0x3] %vm79_vm1, %v126_v52 }
 0x124   :  { %141 = dma.vmem_to_hbm [thread:$0]  %s134_s30, 96, %s136_s7, [#allocation3], %s218_s8, %s218_s8, %s219_s9  }
 0x125   :  { %203 = dma.done.wait [#allocation3], 96  }
 0x126   :  { %204 = vsyncadd [#allocation3], 4294967200 }
 0x127   :  { %146 = vsyncpa [#allocation3], 1 }

</bundles_post_ra>
